<compile_context>
chip_gen: v5e
topology: v5e:2x2
jax: 0.10.0
libtpu: 0.0.40
codegen_flags: <defaults>
</compile_context>

<pallas_src>
import jax
import jax.numpy as jnp
from jax import lax
from jax.experimental import pallas as pl
from jax.experimental.pallas import tpu as pltpu


def _prediction_kernel(x_ref, w_ref, b_ref, out_ref):
    # x_ref:   (tile_rows, H)  row tile of activations
    # w_ref:   (H, O)          weight, pre-transposed host-side; VMEM-resident
    #                          across the whole grid (index_map -> (0, 0))
    # b_ref:   (1, O)          bias, VMEM-resident
    # out_ref: (tile_rows, O)  log-probabilities (f32)
    x = x_ref[...]
    w = w_ref[...]
    b = b_ref[...]

    # logits = x @ W + b : MXU-native (M,K)x(K,N) contraction, f32 accumulate.
    logits = lax.dot_general(
        x, w,
        dimension_numbers=(((1,), (0,)), ((), ())),
        preferred_element_type=jnp.float32,
    ) + b

    # Numerically-stable log_softmax along the last dim (kept in f32).
    m = jnp.max(logits, axis=-1, keepdims=True)
    shifted = logits - m
    lse = jnp.log(jnp.sum(jnp.exp(shifted), axis=-1, keepdims=True))
    out_ref[...] = (shifted - lse).astype(out_ref.dtype)


def prediction_network_rows(x_rows, weight, bias, *, tile_rows=None):
    """
    Row-batched prediction head.

    x_rows: (R, H)  activations -- R may be T*B when the caller folds the
                    recurrence (the high-value structural change).
    weight: (O, H)  PyTorch nn.Linear weight layout (transposed once, host-side).
    bias:   (O,)
    returns (R, O)  float32 log-probabilities.
    """
    R, H = x_rows.shape
    O = weight.shape[0]

    # Host-side, one-time layout plumbing (metadata / tiny transposes).
    w_t = jnp.asarray(weight).T                      # (H, O): native MXU RHS
    b2 = jnp.asarray(bias, jnp.float32).reshape(1, O)

    # Pick the largest useful row tile (multiple of 8 sublanes, <= 1024) and
    # zero-pad rows up to a tile multiple; padded rows are sliced off at the
    # end (log_softmax of zeros is finite, so no NaN hazard).
    if tile_rows is None:
        tile_rows = min(1024, R)
    tile_rows = max(8, ((tile_rows + 7) // 8) * 8)
    padded_rows = ((R + tile_rows - 1) // tile_rows) * tile_rows
    if padded_rows != R:
        x_p = jnp.pad(x_rows, ((0, padded_rows - R), (0, 0)))
    else:
        x_p = x_rows
    grid = (padded_rows // tile_rows,)

    out_bytes = padded_rows * O * 4
    in_bytes = (x_p.size * x_p.dtype.itemsize
                + w_t.size * w_t.dtype.itemsize
                + b2.size * b2.dtype.itemsize)
    cost = pl.CostEstimate(
        flops=2 * R * O * H,
        transcendentals=R * O,          # exp in the softmax
        bytes_accessed=in_bytes + out_bytes,
    )

    out = pl.pallas_call(
        _prediction_kernel,
        out_shape=jax.ShapeDtypeStruct((padded_rows, O), jnp.float32),
        grid=grid,
        in_specs=[
            pl.BlockSpec((tile_rows, H), lambda i: (i, 0)),  # row tiles
            pl.BlockSpec((H, O), lambda i: (0, 0)),          # W: resident
            pl.BlockSpec((1, O), lambda i: (0, 0)),          # b: resident
        ],
        out_specs=pl.BlockSpec((tile_rows, O), lambda i: (i, 0)),
        compiler_params=pltpu.CompilerParams(
            dimension_semantics=("parallel",),   # shards row tiles on v7x's 2 TCs
        ),
        cost_estimate=cost,
    )(x_p, w_t, b2)

    return out[:R] if padded_rows != R else out


def prediction_network_forward(h_t, weight, bias):
    """
    Original module forward: h_t (1, B, H) -> (B, O) log-probs.
    (Metadata-only reshape drops the leading singleton dim.)
    """
    _, B, H = h_t.shape
    return prediction_network_rows(h_t.reshape(B, H), weight, bias)


def prediction_network_forward_batched(h_seq, weight, bias, *, tile_rows=None):
    """
    Recurrence-batched forward: h_seq (T, B, H) -> (T, B, O) log-probs.
    Folds all T recurrence steps into one pallas_call so W is fetched once.
    """
    T, B, H = h_seq.shape
    out = prediction_network_rows(h_seq.reshape(T * B, H), weight, bias,
                                  tile_rows=tile_rows)
    return out.reshape(T, B, -1)


def _reference_rows(x_rows, weight, bias):
    logits = x_rows @ weight.T + bias
    return jax.nn.log_softmax(logits, axis=-1)


if __name__ == "__main__":
    key = jax.random.PRNGKey(0)
    k_h, k_w, k_b, k_s, k_r = jax.random.split(key, 5)

    batch = 8
    input_size = 32   # hidden state size of the core network
    output_size = 16  # number of classes / predictions
    seq_len = 6       # recurrence steps folded into one call for the batched path

    # deterministic synthetic parameters (nn.Linear-style uniform init)
    bound = 1.0 / (input_size ** 0.5)
    weight = jax.random.uniform(k_w, (output_size, input_size),
                                minval=-bound, maxval=bound, dtype=jnp.float32)
    bias = jax.random.uniform(k_b, (output_size,),
                              minval=-bound, maxval=bound, dtype=jnp.float32)

    # --- 1) Original single-step forward: h_t with leading singleton dim ---
    h_t = jax.random.normal(k_h, (1, batch, input_size), dtype=jnp.float32)
    a_t = jax.block_until_ready(prediction_network_forward(h_t, weight, bias))
    ref = _reference_rows(h_t.reshape(batch, input_size), weight, bias)
    assert a_t.shape == (batch, output_size)
    assert jnp.allclose(a_t, ref, atol=1e-5, rtol=1e-5), "single-step mismatch"
    assert jnp.allclose(jnp.sum(jnp.exp(a_t), axis=-1), 1.0, atol=1e-5)

    # --- 2) Recurrence-batched forward (T*B rows, multi-step grid) ----------
    h_seq = jax.random.normal(k_s, (seq_len, batch, input_size), dtype=jnp.float32)
    # small tile_rows=16 here just to exercise the multi-step (grid > 1) path
    a_seq = jax.block_until_ready(
        prediction_network_forward_batched(h_seq, weight, bias, tile_rows=16))
    ref_seq = _reference_rows(h_seq.reshape(seq_len * batch, input_size),
                              weight, bias).reshape(seq_len, batch, output_size)
    assert a_seq.shape == (seq_len, batch, output_size)
    assert jnp.allclose(a_seq, ref_seq, atol=1e-5, rtol=1e-5), "batched mismatch"

    # --- 3) Ragged row count (exercises the zero-pad + slice path) ----------
    h_rag = jax.random.normal(k_r, (5, input_size), dtype=jnp.float32)
    a_rag = jax.block_until_ready(prediction_network_rows(h_rag, weight, bias))
    ref_rag = _reference_rows(h_rag, weight, bias)
    assert a_rag.shape == (5, output_size)
    assert jnp.allclose(a_rag, ref_rag, atol=1e-5, rtol=1e-5), "ragged mismatch"

    print("KERNEL_OK")
</pallas_src>

<mosaic_0001>
module attributes {stable_mosaic.version = 11 : i64} {
  func.func @_prediction_kernel(%arg0: i32, %arg1: memref<8x32xf32, #tpu.memory_space<vmem>>, %arg2: memref<32x16xf32, #tpu.memory_space<vmem>>, %arg3: memref<1x16xf32, #tpu.memory_space<vmem>>, %arg4: memref<8x16xf32, #tpu.memory_space<vmem>>) attributes {dimension_semantics = [#tpu.dimension_semantics<parallel>], iteration_bounds = array<i64: 1>, scalar_prefetch = 0 : i64, scratch_operands = 0 : i64, tpu.core_type = #tpu.core_type<tc>, window_params = [{transform_indices = @transform_0, window_bounds = array<i64: 8, 32>}, {pipeline_mode = #tpu.pipeline_mode<synchronous>, transform_indices = @transform_1, window_bounds = array<i64: 32, 16>}, {pipeline_mode = #tpu.pipeline_mode<synchronous>, transform_indices = @transform_2, window_bounds = array<i64: 1, 16>}, {transform_indices = @transform_3, window_bounds = array<i64: 8, 16>}]} {
    %c0 = arith.constant 0 : index
    %c0_0 = arith.constant 0 : index
    %0 = vector.load %arg1[%c0, %c0_0] : memref<8x32xf32, #tpu.memory_space<vmem>>, vector<8x32xf32>
    %c0_1 = arith.constant 0 : index
    %c0_2 = arith.constant 0 : index
    %1 = vector.load %arg2[%c0_1, %c0_2] : memref<32x16xf32, #tpu.memory_space<vmem>>, vector<32x16xf32>
    %c0_3 = arith.constant 0 : index
    %c0_4 = arith.constant 0 : index
    %2 = vector.load %arg3[%c0_3, %c0_4] : memref<1x16xf32, #tpu.memory_space<vmem>>, vector<1x16xf32>
    %cst = arith.constant dense<0.000000e+00> : vector<8x16xf32>
    %3 = tpu.matmul %0, %1, %cst {dimension_numbers = #tpu.dot_dimension_numbers<[1], [0], [0], [1], [0, 0, 1, 1], [], []>} : vector<8x32xf32>, vector<32x16xf32>, vector<8x16xf32> -> vector<8x16xf32>
    %4 = vector.broadcast %2 : vector<1x16xf32> to vector<8x16xf32>
    %5 = arith.addf %3, %4 : vector<8x16xf32>
    %cst_5 = arith.constant dense<0xFF800000> : vector<8xf32>
    %6 = vector.multi_reduction <maximumf>, %5, %cst_5 [1] : vector<8x16xf32> to vector<8xf32>
    %7 = vector.shape_cast %6 : vector<8xf32> to vector<8x1xf32>
    %8 = vector.broadcast %7 : vector<8x1xf32> to vector<8x16xf32>
    %9 = arith.subf %5, %8 : vector<8x16xf32>
    %10 = math.exp %9 : vector<8x16xf32>
    %cst_6 = arith.constant dense<0.000000e+00> : vector<8xf32>
    %11 = vector.multi_reduction <add>, %10, %cst_6 [1] : vector<8x16xf32> to vector<8xf32>
    %12 = vector.shape_cast %11 : vector<8xf32> to vector<8x1xf32>
    %13 = math.log %12 : vector<8x1xf32>
    %14 = vector.broadcast %13 : vector<8x1xf32> to vector<8x16xf32>
    %15 = arith.subf %9, %14 : vector<8x16xf32>
    %c0_7 = arith.constant 0 : index
    %c0_8 = arith.constant 0 : index
    %16 = vector.load %arg4[%c0_7, %c0_8] : memref<8x16xf32, #tpu.memory_space<vmem>>, vector<8x16xf32>
    tpu.vector_store %arg4[%c0_7, %c0_8], %15 {strides = array<i32>} : memref<8x16xf32, #tpu.memory_space<vmem>>, vector<8x16xf32>,
    return
  }
  func.func @transform_0(%arg0: i32) -> (i32, i32) {
    %c0_i32 = arith.constant 0 : i32
    %c0_i32_0 = arith.constant 0 : i32
    return %arg0, %c0_i32 : i32, i32
  }
  func.func @transform_1(%arg0: i32) -> (i32, i32) {
    %c0_i32 = arith.constant 0 : i32
    %c0_i32_0 = arith.constant 0 : i32
    %c0_i32_1 = arith.constant 0 : i32
    return %c0_i32, %c0_i32_0 : i32, i32
  }
  func.func @transform_2(%arg0: i32) -> (i32, i32) {
    %c0_i32 = arith.constant 0 : i32
    %c0_i32_0 = arith.constant 0 : i32
    %c0_i32_1 = arith.constant 0 : i32
    return %c0_i32, %c0_i32_0 : i32, i32
  }
  func.func @transform_3(%arg0: i32) -> (i32, i32) {
    %c0_i32 = arith.constant 0 : i32
    %c0_i32_0 = arith.constant 0 : i32
    return %arg0, %c0_i32 : i32, i32
  }
}

</mosaic_0001>

<bundles_post_ra>
// kernel: tpu_custom_call.1
= control target key start
LH: loop header
LB: loop body
LE: loop exit
PB: predicated region body
PF: predicated region fallthrough
CT: control target
= control target key end

     0   :  { %s156_s0 = inlined_call_operand.vmem [shape: f32[8,32], index: 0, kind: input, shape index: {}]   ;;  %s157_s1 = inlined_call_operand.vmem [shape: f32[32,16], index: 1, kind: input, shape index: {}]   ;;  %s158_s2 = inlined_call_operand.vmem [shape: f32[1,16], index: 2, kind: input, shape index: {}]   ;;  %s159_s3 = inlined_call_operand.hbm [shape: f32[8,16], index: 3, kind: output, shape index: {}]  }
   0x1   :  { %v19_v0 = vld [vmem:[%s157_s1 + $0x18] sm:$0xff]  ;;  %v18_v1 = vld [vmem:[%s157_s1 + $0x10] sm:$0xff]  ;;  %v17_v2 = vld [vmem:[%s157_s1 + $0x8] sm:$0xff] }
   0x2   :  { %40 = vmatpush.msra.mxu0 %v19_v0 }
   0x3   :  { %8 = vsyncpa [#allocation3], 0  ;;  %v16_v3 = vld [vmem:[%s157_s1] sm:$0xff]  ;;  %vm24_vm0 = vcmask 261120   ;;  %vm48_vm1 = vcmask 130048   ;;  %s69_s25 = sshll.u32 %s159_s3, 4  ;;  %s70_s25 = int_to_ptr.hbm [resolvable:$true] %s69_s25 }
   0x4   :  { %41 = vmatpush.msra.mxu0 %v18_v1  ;;  %v15_v4 = vld [vmem:[%s156_s0] sm:$0xff]  ;;  %s111_s0 = smov [#allocation2]  }
   0x5   :  { %v80_v5 = vld [vmem:[%s158_s2] ss:$0 sm:$0xff]  ;;  %s67_s1 = sshll.u32 %s111_s0, 4  ;;  %s68_s1 = int_to_ptr.vmem [resolvable:$true] %s67_s1 }
   0x6   :  { %42 = vmatpush.msra.mxu0 %v17_v2 }
   0x8   :  { %43 = vmatpush.msra.mxu0 %v16_v3 }
   0x9   :  { %78 = vmatmul.msk.f32.vlgmr.msra.gmra.mxu0 %vm24_vm0, %v15_v4 }
  0x86   :  { %v45_v6 = vpop.f32.mrf.mxu0 }
  0x87   :  { %v46_v7 = vadd.f32 %v80_v5, %v45_v6 }
  0x89   :  { %v49_v8 = vsel %vm48_vm1, %v46_v7, -inf }
  0x8a   :  { %50 = vmax.xlane.f32.xlu0 %v49_v8 }
  0xfd   :  { %v51_v9 = vpop.xlane.xlu0 %50 }
  0xfe   :  { %v52_v10 = vsub.f32 %v46_v7, %v51_v9 }
 0x100   :  { %v53_v11 = vmul.f32 1.442695, %v52_v10 }
 0x102   :  { %81 = vpow2.f32 %v53_v11 }
 0x108   :  { %v82_v12 = vpop.eup %81 }
 0x109   :  { %v55_v13 = vsel %vm48_vm1, %v82_v12, 0.0 }
 0x10a   :  { %56 = vadd.xlane.f32.xlu0 %v55_v13 }
 0x17d   :  { %v57_v14 = vpop.xlane.xlu0 %56 }
 0x17e   :  { %83 = vlog2.f32 %v57_v14 }
 0x184   :  { %v84_v15 = vpop.eup %83 }
 0x185   :  { %v59_v16 = vmul.f32 0.6931472, %v84_v15 }
 0x187   :  { %v60_v17 = vsub.f32 %v52_v10, %v59_v16 }
 0x189   :  { %61 = vst.msk [vmem:[#allocation2] sm:$0xff] %vm48_vm1, %v60_v17 }
 0x18a   :  { %72 = dma.vmem_to_hbm [thread:$0]  %s68_s1, 128, %s70_s25, [#allocation3]  }
 0x18b   :  { %109 = dma.done.wait [#allocation3], 128  }
 0x18c   :  { %110 = vsyncadd [#allocation3], 4294967168 }
 0x18d   :  { %77 = vsyncpa [#allocation3], 1 }

</bundles_post_ra>
